<compile_context>
chip_gen: v5e
topology: v5e:2x2
jax: 0.10.0
libtpu: 0.0.40
codegen_flags: <defaults>
</compile_context>

<pallas_src>
import functools

import jax
import jax.numpy as jnp
from jax import lax
from jax.experimental import pallas as pl
from jax.experimental.pallas import tpu as pltpu


def _round_up(x, m):
    return ((x + m - 1) // m) * m


def _ce_partial_kernel(yp_ref, yt_ref, out_ref, acc_ref, *,
                       n_rows, steps_per_core, eps):
    """Accumulates the sum of per-row cross-entropy for this core's batch slice."""
    p = pl.program_id(0)      # core-split axis ("parallel")
    i = pl.program_id(1)      # sequential reduction axis ("arbitrary")

    @pl.when(i == 0)
    def _():
        acc_ref[...] = jnp.zeros_like(acc_ref)

    logits = yp_ref[...] + jnp.float32(eps)          # (TB, C) f32
    labels = yt_ref[...]                             # (TB, 1) i32
    tb, c = logits.shape

    # Numerically-stable log-sum-exp over the class (lane) axis.
    row_max = jnp.max(logits, axis=-1, keepdims=True)
    lse = row_max + jnp.log(
        jnp.sum(jnp.exp(logits - row_max), axis=-1, keepdims=True))

    # Target-class logit via one-hot select (no gather needed).
    col_ids = lax.broadcasted_iota(jnp.int32, (tb, c), 1)
    tgt_logit = jnp.sum(
        jnp.where(col_ids == labels, logits, jnp.float32(0.0)),
        axis=-1, keepdims=True)

    ce = lse - tgt_logit                             # (TB, 1) per-row CE

    # Zero out padded rows (global row id >= n_rows).
    local_row = lax.broadcasted_iota(jnp.int32, (tb, 1), 0)
    global_row = (p * steps_per_core + i) * tb + local_row
    ce = jnp.where(global_row < n_rows, ce, jnp.float32(0.0))

    # Running sum stays vreg-shaped in VMEM (VPU adds only, no per-step XLU).
    acc_ref[...] += ce

    @pl.when(i == pl.num_programs(1) - 1)
    def _():
        partial = jnp.sum(acc_ref[...], axis=0, keepdims=True)   # (1, 1)
        out_ref[...] = partial.reshape(1, 1, 1)


def focal_loss(y_pred, y_true, gamma=2, eps=1e-10, *, tile_b=1024, num_cores=2):
    """Pallas TPU implementation of FocalLoss.forward. Returns a scalar."""
    assert y_pred.ndim == 2, "y_pred must be (batch, num_classes) logits"
    B, C = y_pred.shape
    assert y_true.shape == (B,), "y_true must be (batch,) integer class labels"

    y_pred = y_pred.astype(jnp.float32)
    labels = y_true.astype(jnp.int32).reshape(B, 1)

    # --- tile-size selection --------------------------------------------------
    c_pad = _round_up(C, 128)                      # lane-padded class dim
    # Keep double-buffered logits tiles within ~16 MiB -> fits v7x's 64 MiB/core
    # VMEM with headroom (and trivially fits 128 MiB on v5e/v6e).
    vmem_budget = 16 * 1024 * 1024
    max_tb_vmem = max(8, (vmem_budget // (2 * 4 * c_pad)) // 8 * 8)
    rows_per_core = _round_up(max(1, -(-B // num_cores)), 8)
    TB = max(8, min(tile_b, max_tb_vmem, rows_per_core))

    steps_per_core = -(-B // (num_cores * TB))     # ceil
    B_pad = num_cores * steps_per_core * TB

    if B_pad != B:
        y_pred = jnp.pad(y_pred, ((0, B_pad - B), (0, 0)))
        labels = jnp.pad(labels, ((0, B_pad - B), (0, 0)))

    # Explicit scoped-VMEM budget for the chosen tile (double-buffered inputs
    # + accumulator scratch), clamped to v7x's physical 64 MiB.
    block_bytes = (2 * TB * c_pad * 4        # logits tiles, double-buffered
                   + 2 * TB * 128 * 4        # label tiles (lane-padded), double-buffered
                   + TB * 128 * 4)           # VMEM accumulator
    vmem_limit = int(min(64 * 1024 * 1024,
                         max(32 * 1024 * 1024, 2 * block_bytes)))

    kernel = functools.partial(
        _ce_partial_kernel,
        n_rows=B, steps_per_core=steps_per_core, eps=float(eps))

    partials = pl.pallas_call(
        kernel,
        out_shape=jax.ShapeDtypeStruct((num_cores, 1, 1), jnp.float32),
        grid_spec=pltpu.PrefetchScalarGridSpec(
            num_scalar_prefetch=0,
            grid=(num_cores, steps_per_core),
            in_specs=[
                pl.BlockSpec((TB, C), lambda p, i: (p * steps_per_core + i, 0)),
                pl.BlockSpec((TB, 1), lambda p, i: (p * steps_per_core + i, 0)),
            ],
            out_specs=pl.BlockSpec((1, 1, 1), lambda p, i: (p, 0, 0)),
            scratch_shapes=[pltpu.VMEM((TB, 1), jnp.float32)],
        ),
        compiler_params=pltpu.CompilerParams(
            dimension_semantics=("parallel", "arbitrary"),
            vmem_limit_bytes=vmem_limit,
        ),
    )(y_pred, labels)

    # Scalar focal modulation (O(1) work) on the mean cross-entropy.
    L = jnp.sum(partials) / jnp.float32(B)
    prob = jnp.exp(-L)
    return (1.0 - prob) ** gamma * L


def focal_loss_ref(y_pred, y_true, gamma=2, eps=1e-10):
    """Pure-JAX reference matching the PyTorch module exactly."""
    logits = y_pred.astype(jnp.float32) + jnp.float32(eps)
    lse = jax.scipy.special.logsumexp(logits, axis=-1)
    tgt = jnp.take_along_axis(
        logits, y_true.astype(jnp.int32)[:, None], axis=-1)[:, 0]
    L = jnp.mean(lse - tgt)                 # CrossEntropyLoss (mean reduction)
    prob = jnp.exp(-L)
    return (1.0 - prob) ** gamma * L


if __name__ == "__main__":
    key = jax.random.PRNGKey(0)
    k1, k2, k3, k4 = jax.random.split(key, 4)

    # Shapes implied by CrossEntropyLoss: y_pred (batch, classes) logits,
    # y_true (batch,) integer class labels.
    B, C = 64, 16
    y_pred = jax.random.normal(k1, (B, C), dtype=jnp.float32)
    y_true = jax.random.randint(k2, (B,), 0, C, dtype=jnp.int32)

    loss = jax.block_until_ready(focal_loss(y_pred, y_true, gamma=2, eps=1e-10))
    ref = focal_loss_ref(y_pred, y_true, gamma=2, eps=1e-10)
    assert jnp.allclose(loss, ref, rtol=1e-5, atol=1e-6), (loss, ref)

    # Ragged batch / class count (exercises the padding + masking path).
    B2, C2 = 37, 10
    y_pred2 = jax.random.normal(k3, (B2, C2), dtype=jnp.float32)
    y_true2 = jax.random.randint(k4, (B2,), 0, C2, dtype=jnp.int32)
    loss2 = jax.block_until_ready(focal_loss(y_pred2, y_true2))
    ref2 = focal_loss_ref(y_pred2, y_true2)
    assert jnp.allclose(loss2, ref2, rtol=1e-5, atol=1e-6), (loss2, ref2)

    print("KERNEL_OK")
</pallas_src>

<mosaic_0001>
module attributes {stable_mosaic.version = 11 : i64} {
  func.func @_ce_partial_kernel(%arg0: i32, %arg1: i32, %arg2: memref<32x16xf32, #tpu.memory_space<vmem>>, %arg3: memref<32x1xi32, #tpu.memory_space<vmem>>, %arg4: memref<1x1x1xf32, #tpu.memory_space<vmem>>, %arg5: memref<32x1xf32, #tpu.memory_space<vmem>>) attributes {dimension_semantics = [#tpu.dimension_semantics<parallel>, #tpu.dimension_semantics<arbitrary>], iteration_bounds = array<i64: 2, 1>, scalar_prefetch = 0 : i64, scratch_operands = 1 : i64, tpu.core_type = #tpu.core_type<tc>, window_params = [{transform_indices = @transform_0, window_bounds = array<i64: 32, 16>}, {transform_indices = @transform_1, window_bounds = array<i64: 32, 1>}, {transform_indices = @transform_2, window_bounds = array<i64: 1, 1, 1>}]} {
    %c0_i32 = arith.constant 0 : i32
    %0 = arith.cmpi eq, %arg1, %c0_i32 : i32
    %1 = arith.extui %0 : i1 to i32
    %c0_i32_0 = arith.constant 0 : i32
    %2 = arith.cmpi ne, %1, %c0_i32_0 : i32
    scf.if %2 {
      %cst_15 = arith.constant 0.000000e+00 : f32
      %40 = vector.broadcast %cst_15 : f32 to vector<32x1xf32>
      %c0_16 = arith.constant 0 : index
      %c0_17 = arith.constant 0 : index
      %41 = vector.load %arg5[%c0_16, %c0_17] : memref<32x1xf32, #tpu.memory_space<vmem>>, vector<32x1xf32>
      tpu.vector_store %arg5[%c0_16, %c0_17], %40 {strides = array<i32>} : memref<32x1xf32, #tpu.memory_space<vmem>>, vector<32x1xf32>,
    } else {
    }
    %c0 = arith.constant 0 : index
    %c0_1 = arith.constant 0 : index
    %3 = vector.load %arg2[%c0, %c0_1] : memref<32x16xf32, #tpu.memory_space<vmem>>, vector<32x16xf32>
    %cst = arith.constant 1.000000e-10 : f32
    %4 = vector.broadcast %cst : f32 to vector<32x16xf32>
    %5 = arith.addf %3, %4 : vector<32x16xf32>
    %c0_2 = arith.constant 0 : index
    %c0_3 = arith.constant 0 : index
    %6 = vector.load %arg3[%c0_2, %c0_3] : memref<32x1xi32, #tpu.memory_space<vmem>>, vector<32x1xi32>
    %cst_4 = arith.constant dense<0xFF800000> : vector<32xf32>
    %7 = vector.multi_reduction <maximumf>, %5, %cst_4 [1] : vector<32x16xf32> to vector<32xf32>
    %8 = vector.shape_cast %7 : vector<32xf32> to vector<32x1xf32>
    %9 = vector.broadcast %8 : vector<32x1xf32> to vector<32x16xf32>
    %10 = arith.subf %5, %9 : vector<32x16xf32>
    %11 = math.exp %10 : vector<32x16xf32>
    %cst_5 = arith.constant dense<0.000000e+00> : vector<32xf32>
    %12 = vector.multi_reduction <add>, %11, %cst_5 [1] : vector<32x16xf32> to vector<32xf32>
    %13 = vector.shape_cast %12 : vector<32xf32> to vector<32x1xf32>
    %14 = math.log %13 : vector<32x1xf32>
    %15 = arith.addf %8, %14 : vector<32x1xf32>
    %16 = tpu.iota {dimensions = array<i32: 1>} : vector<32x16xi32>
    %17 = vector.broadcast %6 : vector<32x1xi32> to vector<32x16xi32>
    %18 = arith.cmpi eq, %16, %17 : vector<32x16xi32>
    %cst_6 = arith.constant 0.000000e+00 : f32
    %19 = vector.broadcast %cst_6 : f32 to vector<32x16xf32>
    %20 = arith.select %18, %5, %19 : vector<32x16xi1>, vector<32x16xf32>
    %cst_7 = arith.constant dense<0.000000e+00> : vector<32xf32>
    %21 = vector.multi_reduction <add>, %20, %cst_7 [1] : vector<32x16xf32> to vector<32xf32>
    %22 = vector.shape_cast %21 : vector<32xf32> to vector<32x1xf32>
    %23 = arith.subf %15, %22 : vector<32x1xf32>
    %24 = tpu.iota {dimensions = array<i32: 0>} : vector<32x1xi32>
    %c1_i32 = arith.constant 1 : i32
    %25 = arith.muli %arg0, %c1_i32 : i32
    %26 = arith.addi %25, %arg1 : i32
    %c32_i32 = arith.constant 32 : i32
    %27 = arith.muli %26, %c32_i32 : i32
    %28 = vector.broadcast %27 : i32 to vector<32x1xi32>
    %29 = arith.addi %28, %24 : vector<32x1xi32>
    %c64_i32 = arith.constant 64 : i32
    %30 = vector.broadcast %c64_i32 : i32 to vector<32x1xi32>
    %31 = arith.cmpi slt, %29, %30 : vector<32x1xi32>
    %cst_8 = arith.constant 0.000000e+00 : f32
    %32 = vector.broadcast %cst_8 : f32 to vector<32x1xf32>
    %33 = arith.select %31, %23, %32 : vector<32x1xi1>, vector<32x1xf32>
    %c0_9 = arith.constant 0 : index
    %c0_10 = arith.constant 0 : index
    %34 = vector.load %arg5[%c0_9, %c0_10] : memref<32x1xf32, #tpu.memory_space<vmem>>, vector<32x1xf32>
    %35 = arith.addf %34, %33 : vector<32x1xf32>
    %c0_11 = arith.constant 0 : index
    %c0_12 = arith.constant 0 : index
    %36 = vector.load %arg5[%c0_11, %c0_12] : memref<32x1xf32, #tpu.memory_space<vmem>>, vector<32x1xf32>
    tpu.vector_store %arg5[%c0_11, %c0_12], %35 {strides = array<i32>} : memref<32x1xf32, #tpu.memory_space<vmem>>, vector<32x1xf32>,
    %c0_i32_13 = arith.constant 0 : i32
    %37 = arith.cmpi eq, %arg1, %c0_i32_13 : i32
    %38 = arith.extui %37 : i1 to i32
    %c0_i32_14 = arith.constant 0 : i32
    %39 = arith.cmpi ne, %38, %c0_i32_14 : i32
    scf.if %39 {
      %c0_15 = arith.constant 0 : index
      %c0_16 = arith.constant 0 : index
      %40 = vector.load %arg5[%c0_15, %c0_16] : memref<32x1xf32, #tpu.memory_space<vmem>>, vector<32x1xf32>
      %cst_17 = arith.constant dense<0.000000e+00> : vector<1xf32>
      %41 = vector.multi_reduction <add>, %40, %cst_17 [0] : vector<32x1xf32> to vector<1xf32>
      %42 = vector.shape_cast %41 : vector<1xf32> to vector<1x1xf32>
      %43 = vector.shape_cast %42 : vector<1x1xf32> to vector<1x1x1xf32>
      %c0_18 = arith.constant 0 : index
      %c0_19 = arith.constant 0 : index
      %c0_20 = arith.constant 0 : index
      %44 = vector.load %arg4[%c0_18, %c0_19, %c0_20] : memref<1x1x1xf32, #tpu.memory_space<vmem>>, vector<1x1x1xf32>
      tpu.vector_store %arg4[%c0_18, %c0_19, %c0_20], %43 {strides = array<i32>} : memref<1x1x1xf32, #tpu.memory_space<vmem>>, vector<1x1x1xf32>,
    } else {
    }
    return
  }
  func.func @transform_0(%arg0: i32, %arg1: i32) -> (i32, i32) {
    %c1_i32 = arith.constant 1 : i32
    %0 = arith.muli %arg0, %c1_i32 : i32
    %1 = arith.addi %0, %arg1 : i32
    %c0_i32 = arith.constant 0 : i32
    %c0_i32_0 = arith.constant 0 : i32
    return %1, %c0_i32 : i32, i32
  }
  func.func @transform_1(%arg0: i32, %arg1: i32) -> (i32, i32) {
    %c1_i32 = arith.constant 1 : i32
    %0 = arith.muli %arg0, %c1_i32 : i32
    %1 = arith.addi %0, %arg1 : i32
    %c0_i32 = arith.constant 0 : i32
    %c0_i32_0 = arith.constant 0 : i32
    return %1, %c0_i32 : i32, i32
  }
  func.func @transform_2(%arg0: i32, %arg1: i32) -> (i32, i32, i32) {
    %c0_i32 = arith.constant 0 : i32
    %c0_i32_0 = arith.constant 0 : i32
    %c0_i32_1 = arith.constant 0 : i32
    return %arg0, %c0_i32, %c0_i32_0 : i32, i32, i32
  }
}

</mosaic_0001>

<bundles_post_ra>
// kernel: tpu_custom_call.1
= control target key start
LH: loop header
LB: loop body
LE: loop exit
PB: predicated region body
PF: predicated region fallthrough
CT: control target
= control target key end

     0   :  { %s518_s9 = smov 0   ;;  %s520_s10 = smov 0   ;;  %s605_s0 = inlined_call_operand.vmem [shape: f32[64,16], index: 0, kind: input, shape index: {}]   ;;  %s606_s1 = inlined_call_operand.vmem [shape: s32[64,1], index: 1, kind: input, shape index: {}]   ;;  %s607_s2 = inlined_call_operand.vmem [shape: f32[2,1,1], index: 2, kind: output, shape index: {}]  }
   0x1   :  { %s522_s11 = smov 0  }
   0x2 LB: > { %s24_s12 = sadd.s32 1, %s495_s10  ;;  %p424_p0 = scmp.ge.s32.totalorder %s499_s11, 1  ;;  %s499_s11 = sphi %s522_s11, %s12_s11   ;;  %s495_s10 = sphi %s520_s10, %s609_s10   ;;  %s491_s9 = sphi %s518_s9, %s608_s9  }
   0x3   : > { %p26_p1 = scmp.ge.s32.totalorder %s24_s12, 2  ;;  %p144_p2 = scmp.lt.s32.totalorder %s499_s11, 3 }
   0x5   : > { %s611_s12 = smov (%p26_p1, %s24_s12), 0  ;;  %p145_p3 = pnand %p424_p0, %p144_p2 }
   0x6   : > { %s425_s13 = sshll.u32 (!%p145_p3), %s491_s9, 2  ;;  %s429_s21 = sshll.u32 (!%p145_p3), %s491_s9, 5 }
   0x7   : > { %148 = sbr.rel (%p145_p3) target bundleno = 327 (0x147), region = 28  ;;  %p173_p4 = scmp.lt.s32.totalorder (!%p145_p3), %s425_s13, 7 }
   0x8   : > { %p187_p5 = scmp.lt.s32.totalorder (!%p145_p3), %s491_s9, 1 }
   0xc   : > { %v501_v0 = vmov 0   ;;  %s613_s13 = smov (!%p173_p4, %s425_s13), 7  ;;  %vm211_vm0 = vcmask 130048   ;;  %v260_v23 = vlaneseq  ;;  %vm194_vm5 = vcmask 7168   ;;  %s615_s9 = smov (!%p187_p5, %s491_s9), 1 }
   0xd   : > { %458 = vset.pattern.permute.xlu2 %v501_v0  ;;  %460 = vset.pattern.permute.xlu1 %v501_v0  ;;  %s426_s14 = sshll.u32 %s613_s13, 3  ;;  %v502_v51 = vmov 0.0   ;;  %v305_v54 = vstv %s429_s21  ;;  %s189_s24 = scalar_lea.vmem %s607_s2, %s615_s9  ;;  %vm351_vm10 = vcmask 0  }
   0xe   : > { %459 = vset.pattern.permute.xlu0 %v501_v0  ;;  %s176_s17 = scalar_lea.vmem %s605_s0, %s426_s14  ;;  %s184_s20 = scalar_lea.vmem %s606_s1, %s426_s14  ;;  %v261_v27 = vand.u32 127, %v260_v23  ;;  %195 = vst.msk [vmem:[#allocation2] sm:$0xff] %vm194_vm5, %v502_v51  ;;  %v299_v53 = vshrl.u32 %v260_v23, 7 }
   0xf   : > { %v201_v1 = vld [vmem:[%s176_s17 + $0x10] sm:$0xff]  ;;  %v199_v2 = vld [vmem:[%s176_s17] sm:$0xff]  ;;  %v200_v5 = vld [vmem:[%s176_s17 + $0x8] sm:$0xff]  ;;  %196 = vst.msk [vmem:[#allocation2 + $0x8] sm:$0xff] %vm194_vm5, %v502_v51 }
  0x10   : > { %v545_v3 = vadd.f32 1e-10, %v201_v1  ;;  %v203_v4 = vadd.f32 1e-10, %v199_v2  ;;  %v202_v6 = vld [vmem:[%s176_s17 + $0x18] sm:$0xff]  ;;  %v207_v7 = vld [vmem:[%s184_s20] sm:$0xff]  ;;  %v306_v56 = vadd.s32 %v305_v54, %v299_v53 }
  0x11   : > { %263 = vperm.xlu2 %458, %v207_v7   ;;  %v204_v10 = vadd.f32 1e-10, %v200_v5  ;;  %v206_v11 = vadd.f32 1e-10, %v202_v6  ;;  %v208_v12 = vld [vmem:[%s184_s20 + $0x8] sm:$0xff]  ;;  %v209_v15 = vld [vmem:[%s184_s20 + $0x10] sm:$0xff] }
  0x12   : > { %v218_v8 = vsel %vm211_vm0, %v545_v3, -inf  ;;  %v212_v9 = vsel %vm211_vm0, %v203_v4, -inf  ;;  %v210_v16 = vld [vmem:[%s184_s20 + $0x18] sm:$0xff]  ;;  %197 = vst.msk [vmem:[#allocation2 + $0x10] sm:$0xff] %vm194_vm5, %v502_v51  ;;  %vm310_vm6 = vcmp.lt.s32.totalorder %v306_v56, 64  ;;  %v302_v6 = vadd.s32 24, %v299_v53 }
  0x13   : > { %219 = vmax.xlane.f32.xlu1 %v218_v8  ;;  %213 = vmax.xlane.f32.xlu0 %v212_v9  ;;  %v215_v13 = vsel %vm211_vm0, %v204_v10, -inf  ;;  %v221_v14 = vsel %vm211_vm0, %v206_v11, -inf  ;;  %198 = vst.msk [vmem:[#allocation2 + $0x18] sm:$0xff] %vm194_vm5, %v502_v51 }
  0x15   : > { %v318_v61 = vld [vmem:[#allocation2] sm:$0xff] }
  0x19   : > { %266 = vperm.xlu2 %458, %v208_v12  }
  0x1a   : > { %v321_v23 = vld [vmem:[#allocation2 + $0x18] sm:$0xff] }
  0x1b   : > { %216 = vmax.xlane.f32.xlu0 %v215_v13  ;;  %222 = vmax.xlane.f32.xlu1 %v221_v14  ;;  %v301_v14 = vadd.s32 16, %v299_v53 }
  0x2f   : > { %269 = vperm.xlu0 %459, %v209_v15   ;;  %v319_v15 = vld [vmem:[#allocation2 + $0x8] sm:$0xff] }
  0x34   : > { %272 = vperm.xlu1 %460, %v210_v16  }
  0x6b   : > { %v264_v32 = vpop.permute.xlu2 %263 }
  0x6c   : > { %vm274_vm1 = vcmp.eq.s32.totalorder %v261_v27, %v264_v32 }
  0x6d   : > { %v278_v36 = vsel %vm274_vm1, %v203_v4, 0.0 }
  0x6e   : > { %v282_v38 = vsel %vm211_vm0, %v278_v36, 0.0 }
  0x73   : > { %v267_v42 = vpop.permute.xlu2 %266 }
  0x74   : > { %vm275_vm2 = vcmp.eq.s32.totalorder %v261_v27, %v267_v42 }
  0x75   : > { %v279_v44 = vsel %vm275_vm2, %v204_v10, 0.0 }
  0x76   : > { %v285_v48 = vsel %vm211_vm0, %v279_v44, 0.0 }
  0x86   : > { %v552_v17 = vpop.xlane.xlu1 %219  ;;  %v554_v18 = vpop.xlane.xlu0 %213 }
  0x87   : > { %v226_v19 = vsub.f32 %v545_v3, %v552_v17  ;;  %v224_v20 = vsub.f32 %v203_v4, %v554_v18  ;;  %v300_v4 = vadd.s32 8, %v299_v53 }
  0x89   : > { %v232_v21 = vmul.f32 1.442695, %v226_v19  ;;  %v228_v22 = vmul.f32 1.442695, %v224_v20  ;;  %v307_v7 = vadd.s32 %v305_v54, %v300_v4 }
  0x8b   : > { %461 = vpow2.f32 %v232_v21  ;;  %vm311_vm7 = vcmp.lt.s32.totalorder %v307_v7, 64 }
  0x8c   : > { %463 = vpow2.f32 %v228_v22 }
  0x8e   : > { %v559_v24 = vpop.xlane.xlu0 %216  ;;  %v561_v25 = vpop.xlane.xlu1 %222 }
  0x8f   : > { %v225_v26 = vsub.f32 %v204_v10, %v559_v24  ;;  %v227_v28 = vsub.f32 %v206_v11, %v561_v25  ;;  %v309_v10 = vadd.s32 %v305_v54, %v302_v6 }
  0x91   : > { %v462_v29 = vpop.eup %461  ;;  %v230_v30 = vmul.f32 1.442695, %v225_v26  ;;  %v234_v35 = vmul.f32 1.442695, %v227_v28  ;;  %vm313_vm8 = vcmp.lt.s32.totalorder %v309_v10, 64 }
  0x92   : > { %v464_v31 = vpop.eup %463  ;;  %v242_v33 = vsel %vm211_vm0, %v462_v29, 0.0 }
  0x93   : > { %465 = vpow2.f32 %v230_v30  ;;  %243 = vadd.xlane.f32.xlu0 %v242_v33  ;;  %v236_v34 = vsel %vm211_vm0, %v464_v31, 0.0  ;;  %v320_v31 = vld [vmem:[#allocation2 + $0x10] sm:$0xff] }
  0x94   : > { %237 = vadd.xlane.f32.xlu2 %v236_v34  ;;  %467 = vpow2.f32 %v234_v35 }
  0x99   : > { %v466_v37 = vpop.eup %465 }
  0x9a   : > { %v239_v39 = vsel %vm211_vm0, %v466_v37, 0.0  ;;  %v468_v40 = vpop.eup %467 }
  0x9b   : > { %240 = vadd.xlane.f32.xlu1 %v239_v39  ;;  %v245_v41 = vsel %vm211_vm0, %v468_v40, 0.0 }
  0x9c   : > { %283 = vadd.xlane.f32.xlu2 %v282_v38 }
  0xa1   : > { %v270_v46 = vpop.permute.xlu0 %269 }
  0xa2   : > { %vm276_vm4 = vcmp.eq.s32.totalorder %v261_v27, %v270_v46 }
  0xa3   : > { %v280_v49 = vsel %vm276_vm4, %v545_v3, 0.0 }
  0xa4   : > { %246 = vadd.xlane.f32.xlu2 %v245_v41  ;;  %v288_v50 = vsel %vm211_vm0, %v280_v49, 0.0 }
  0xa6   : > { %v273_v43 = vpop.permute.xlu1 %272 }
  0xa7   : > { %vm277_vm3 = vcmp.eq.s32.totalorder %v261_v27, %v273_v43  ;;  %v308_v27 = vadd.s32 %v305_v54, %v301_v14 }
  0xa8   : > { %v281_v45 = vsel %vm277_vm3, %v206_v11, 0.0 }
  0xa9   : > { %v291_v47 = vsel %vm211_vm0, %v281_v45, 0.0  ;;  %vm312_vm9 = vcmp.lt.s32.totalorder %v308_v27, 64 }
  0xaa   : > { %292 = vadd.xlane.f32.xlu1 %v291_v47 }
  0xac   : > { %286 = vadd.xlane.f32.xlu2 %v285_v48 }
  0xb4   : > { %289 = vadd.xlane.f32.xlu2 %v288_v50 }
 0x106   : > { %v244_v0 = vpop.xlane.xlu0 %243 }
 0x107   : > { %v238_v52 = vpop.xlane.xlu2 %237 }
 0x108   : > { %469 = vlog2.f32 %v238_v52 }
 0x10e   : > { %v470_v55 = vpop.eup %469  ;;  %v241_v57 = vpop.xlane.xlu1 %240 }
 0x10f   : > { %v249_v58 = vmul.f32 0.6931472, %v470_v55  ;;  %v284_v59 = vpop.xlane.xlu2 %283  ;;  %471 = vlog2.f32 %v241_v57 }
 0x111   : > { %v256_v60 = vadd.f32 %v249_v58, %v554_v18 }
 0x113   : > { %v294_v62 = vsub.f32 %v256_v60, %v284_v59 }
 0x115   : > { %v314_v63 = vsel %vm310_vm6, %v294_v62, 0.0  ;;  %v472_v2 = vpop.eup %471 }
 0x116   : > { %v322_v1 = vadd.f32 %v318_v61, %v314_v63  ;;  %v251_v5 = vmul.f32 0.6931472, %v472_v2 }
 0x117   : > { %v247_v3 = vpop.xlane.xlu2 %246 }
 0x118   : > { %327 = vst.msk [vmem:[#allocation2] sm:$0xff] %vm194_vm5, %v322_v1  ;;  %473 = vlog2.f32 %v247_v3  ;;  %v257_v9 = vadd.f32 %v251_v5, %v559_v24 }
 0x119   : > { %475 = vlog2.f32 %v244_v0 }
 0x11d   : > { %v293_v18 = vpop.xlane.xlu1 %292 }
 0x11e   : > { %v474_v8 = vpop.eup %473 }
 0x11f   : > { %v476_v11 = vpop.eup %475  ;;  %v255_v12 = vmul.f32 0.6931472, %v474_v8  ;;  %v287_v13 = vpop.xlane.xlu2 %286  ;;  %v334_v35 = vld [vmem:[#allocation2] sm:$0xff] }
 0x120   : > { %v295_v16 = vsub.f32 %v257_v9, %v287_v13  ;;  %v253_v20 = vmul.f32 0.6931472, %v476_v11  ;;  %v338_v37 = vsel %vm194_vm5, %v334_v35, 0.0 }
 0x121   : > { %v259_v19 = vadd.f32 %v255_v12, %v561_v25 }
 0x122   : > { %v315_v21 = vsel %vm311_vm7, %v295_v16, 0.0  ;;  %v258_v29 = vadd.f32 %v253_v20, %v552_v17 }
 0x123   : > { %v323_v22 = vadd.f32 %v319_v15, %v315_v21  ;;  %v297_v26 = vsub.f32 %v259_v19, %v293_v18 }
 0x125   : > { %328 = vst.msk [vmem:[#allocation2 + $0x8] sm:$0xff] %vm194_vm5, %v323_v22  ;;  %v317_v24 = vsel %vm313_vm8, %v297_v26, 0.0 }
 0x126   : > { %v325_v28 = vadd.f32 %v321_v23, %v317_v24 }
 0x127   : > { %v290_v30 = vpop.xlane.xlu2 %289 }
 0x128   : > { %330 = vst.msk [vmem:[#allocation2 + $0x18] sm:$0xff] %vm194_vm5, %v325_v28  ;;  %v296_v32 = vsub.f32 %v258_v29, %v290_v30 }
 0x12a   : > { %v316_v25 = vsel %vm312_vm9, %v296_v32, 0.0 }
 0x12b   : > { %v324_v33 = vadd.f32 %v320_v31, %v316_v25 }
 0x12c   : > { %v335_v34 = vld [vmem:[#allocation2 + $0x8] sm:$0xff] }
 0x12d   : > { %329 = vst.msk [vmem:[#allocation2 + $0x10] sm:$0xff] %vm194_vm5, %v324_v33  ;;  %v339_v36 = vsel %vm194_vm5, %v335_v34, 0.0 }
 0x12e   : > { %v340_v38 = vadd.f32 %v339_v36, %v338_v37 }
 0x12f   : > { %v337_v17 = vld [vmem:[#allocation2 + $0x18] sm:$0xff] }
 0x130   : > { %v343_v42 = vsel %vm194_vm5, %v337_v17, 0.0 }
 0x134   : > { %v336_v39 = vld [vmem:[#allocation2 + $0x10] sm:$0xff] }
 0x135   : > { %v341_v40 = vsel %vm194_vm5, %v336_v39, 0.0 }
 0x136   : > { %v342_v41 = vadd.f32 %v341_v40, %v340_v38 }
 0x138   : > { %v344_v43 = vadd.f32 %v343_v42, %v342_v41 }
 0x13a   : > { %v345_v44 = vrot.slane %v344_v43, 4 }
 0x13c   : > { %v346_v45 = vadd.f32 %v345_v44, %v344_v43 }
 0x13e   : > { %v347_v46 = vrot.slane %v346_v45, 2 }
 0x140   : > { %v348_v47 = vadd.f32 %v347_v46, %v346_v45 }
 0x142   : > { %v349_v48 = vrot.slane %v348_v47, 1 }
 0x144   : > { %v350_v49 = vadd.f32 %v349_v48, %v348_v47 }
 0x146   : > { %352 = vst.msk [vmem:[%s189_s24] sm:$0x1] %vm351_vm10, %v350_v49 }
 0x147 PF: > { %s12_s11 = sadd.s32 1, %s499_s11   ;;  %s608_s9 = smov %s495_s10 }
 0x148   : > { %p9_p6 = scmp.ge.s32.totalorder %s12_s11, 4   ;;  %s609_s10 = smov %s611_s12 }
 0x14a   :  { %11 = sbr.rel (!%p9_p6) target bundleno = 2 (0x2), region = 69 }

</bundles_post_ra>
